<compile_context>
chip_gen: v6e
topology: v6e:2x2x1
jax: 0.10.0
libtpu: 0.0.40
codegen_flags: <defaults>
</compile_context>

<pallas_src>
import jax
import jax.numpy as jnp
from jax import lax
from jax.experimental import pallas as pl
from jax.experimental.pallas import tpu as pltpu

EMBED_DIM = 300  # matches self.embedding_dim = 300


def _fasttext_kernel(ids_ref, table_ref, emb_ref):
    """One grid step == one tile of `Bt` utterances.

    ids_ref   : SMEM (B_pad * T_pad,) int32  flat token ids (pad id = 0),
                scalar-prefetched, pre-clamped to [0, V-1] in the wrapper.
    table_ref : VMEM (V, D)        f32   embedding table; row 0 (pad) zeroed.
    emb_ref   : VMEM (Bt, T_pad, D) f32  output embeddings.
    """
    g = pl.program_id(0)
    bt, t_pad, _ = emb_ref.shape
    n_groups = t_pad // 8  # wrapper guarantees T_pad % 8 == 0

    def gather_group(lb, grp):
        # 8 consecutive tokens of utterance `lb` -> one sublane-dense (8, D)
        # tile -> one dense store.  Padded / out-of-length tokens have id 0
        # and table row 0 is zero, so no validity multiply is needed.
        base = (g * bt + lb) * t_pad + grp * 8
        rows = [table_ref[pl.ds(ids_ref[base + j], 1), :] for j in range(8)]
        tile = jnp.concatenate(rows, axis=0)  # (8, D)
        t0 = grp * 8
        if not isinstance(t0, int):
            t0 = pl.multiple_of(t0, 8)
        emb_ref[lb, pl.ds(t0, 8), :] = tile

    total = bt * n_groups
    if total <= 32:
        # Small tiles: fully unroll at trace time.
        for i in range(total):
            gather_group(i // n_groups, i % n_groups)
    else:
        def body(i, carry):
            gather_group(i // n_groups, i % n_groups)
            return carry
        lax.fori_loop(0, total, body, 0, unroll=8)


def fasttext_layer_pallas(token_ids, lengths, table, *, b_tile=16, pad_id=0):
    """token_ids: int [B, T] (pad_id marks padding); lengths: int [B]; table: f32 [V, D]."""
    B, T = token_ids.shape
    V, D = table.shape

    # ---- Wrapper-side (vectorized XLA) preprocessing -----------------------
    # Zero the pad row so padded / out-of-length positions gather zeros,
    # matching nn.utils.rnn.pad_sequence(padding_value=0).
    table = table.astype(jnp.float32).at[pad_id].set(0.0)
    # Clamp once here (jnp.take-style clip) rather than per token in-kernel;
    # also keeps the unchecked in-kernel dynamic row loads in bounds.
    ids = jnp.clip(token_ids.astype(jnp.int32), 0, V - 1)

    # Pad T to a multiple of 8 so the kernel issues aligned (8, D) stores.
    T_pad = ((T + 7) // 8) * 8
    if T_pad != T:
        ids = jnp.pad(ids, ((0, 0), (0, T_pad - T)), constant_values=pad_id)

    # Batch tile; pad B up to a multiple of it (padded rows are all pad_id).
    Bt = max(1, min(B, b_tile))
    B_pad = ((B + Bt - 1) // Bt) * Bt
    if B_pad != B:
        ids = jnp.pad(ids, ((0, B_pad - B), (0, 0)), constant_values=pad_id)

    # Flat 1-D SMEM prefetch (a 2-D SMEM array pads its last dim to 128 words).
    ids_flat = ids.reshape(-1)

    # Mask is a trivial broadcast-compare; XLA computes/fuses it for free.
    mask = (jnp.arange(T, dtype=jnp.int32)[None, :]
            < lengths.astype(jnp.int32)[:, None]).astype(jnp.float32)

    # ---- VMEM budget: generation-aware cap with headroom -------------------
    try:
        vmem_cap = int(pltpu.get_tpu_info().vmem_capacity_bytes)
    except Exception:
        vmem_cap = 64 << 20
    table_bytes = 2 * V * D * 4            # worst case (double-buffered fallback)
    out_bytes = 2 * Bt * T_pad * D * 4     # double-buffered output blocks
    need = table_bytes + out_bytes + (4 << 20)
    vmem_bytes = int(min(max(need, 16 << 20), vmem_cap * 0.85))

    grid = (B_pad // Bt,)
    out_shape = jax.ShapeDtypeStruct((B_pad, T_pad, D), jnp.float32)

    def run(table_pipeline_mode):
        spec_kwargs = {}
        if table_pipeline_mode is not None:
            spec_kwargs["pipeline_mode"] = table_pipeline_mode
        grid_spec = pltpu.PrefetchScalarGridSpec(
            num_scalar_prefetch=1,                      # flat token ids -> SMEM
            grid=grid,
            in_specs=[
                pl.BlockSpec((V, D), lambda g, ids: (0, 0), **spec_kwargs),
            ],
            out_specs=pl.BlockSpec((Bt, T_pad, D), lambda g, ids: (g, 0, 0)),
        )
        return pl.pallas_call(
            _fasttext_kernel,
            grid_spec=grid_spec,
            out_shape=out_shape,
            compiler_params=pltpu.CompilerParams(
                dimension_semantics=("parallel",),      # batch tiles shard across TCs
                vmem_limit_bytes=vmem_bytes,
            ),
        )(ids_flat, table)

    try:
        # Table index_map is constant -> single-buffer it (halves its VMEM).
        emb = run(pl.Buffered(1))
    except Exception:
        # Fallback for JAX versions without single-buffer pipeline_mode support.
        emb = run(None)

    if B_pad != B or T_pad != T:
        emb = emb[:B, :T]
    return emb, mask


# ------------------------------ Python glue --------------------------------
def tokenize_batch(utterances):
    """Deterministic toy tokenizer: vocab = sorted unique tokens (id 0 = <pad>)."""
    # TODO(synk): real FastText('simple') pretrained vectors + string splitting
    # have no Pallas equivalent; a synthetic vocab/table stands in for them.
    split = [u.split() for u in utterances]
    vocab = sorted({tok for toks in split for tok in toks})
    tok2id = {tok: i + 1 for i, tok in enumerate(vocab)}     # 0 reserved for pad
    lengths = [len(toks) for toks in split]
    t_max = max(lengths)
    ids = [[tok2id[t] for t in toks] + [0] * (t_max - len(toks)) for toks in split]
    return (
        jnp.asarray(ids, dtype=jnp.int32),
        jnp.asarray(lengths, dtype=jnp.int32),
        len(vocab) + 1,
    )


if __name__ == "__main__":
    utterances = [
        "hello world this is a simple test utterance",   # 8 tokens
        "pallas tpu kernel demo now",                     # 5 tokens
    ]
    token_ids, lengths, vocab_size = tokenize_batch(utterances)

    # Deterministic synthetic "FastText" embedding table (row 0 = pad token).
    key = jax.random.PRNGKey(0)
    table = jax.random.normal(key, (vocab_size, EMBED_DIM), dtype=jnp.float32)

    emb, mask = fasttext_layer_pallas(token_ids, lengths, table)
    jax.block_until_ready((emb, mask))

    # Reference in plain JAX.
    ref_emb = jnp.take(table, token_ids, axis=0)
    t_idx = jnp.arange(token_ids.shape[1])[None, :]
    ref_mask = (t_idx < lengths[:, None]).astype(jnp.float32)
    ref_emb = ref_emb * ref_mask[..., None]

    assert emb.shape == (2, 8, EMBED_DIM) and mask.shape == (2, 8)
    assert jnp.allclose(emb, ref_emb, atol=1e-6)
    assert jnp.allclose(mask, ref_mask)

    print("KERNEL_OK")
</pallas_src>

<mosaic_0001>
module attributes {stable_mosaic.version = 11 : i64} {
  func.func @_fasttext_kernel(%arg0: i32, %arg1: memref<16xi32, #tpu.memory_space<smem>>, %arg2: memref<14x300xf32, #tpu.memory_space<vmem>>, %arg3: memref<2x8x300xf32, #tpu.memory_space<vmem>>) attributes {dimension_semantics = [#tpu.dimension_semantics<parallel>], iteration_bounds = array<i64: 1>, scalar_prefetch = 1 : i64, scratch_operands = 0 : i64, tpu.core_type = #tpu.core_type<tc>, window_params = [{pipeline_mode = #tpu.pipeline_mode<synchronous>, transform_indices = @transform_0, window_bounds = array<i64: 14, 300>}, {transform_indices = @transform_1, window_bounds = array<i64: 2, 8, 300>}]} {
    %c2_i32 = arith.constant 2 : i32
    %0 = arith.muli %arg0, %c2_i32 : i32
    %c0_i32 = arith.constant 0 : i32
    %1 = arith.addi %0, %c0_i32 : i32
    %c8_i32 = arith.constant 8 : i32
    %2 = arith.muli %1, %c8_i32 : i32
    %c0_i32_0 = arith.constant 0 : i32
    %3 = arith.addi %2, %c0_i32_0 : i32
    %c0_i32_1 = arith.constant 0 : i32
    %4 = arith.addi %3, %c0_i32_1 : i32
    %5 = arith.index_cast %4 : i32 to index
    %6 = memref.load %arg1[%5] : memref<16xi32, #tpu.memory_space<smem>>
    %7 = arith.index_cast %6 : i32 to index
    %c0 = arith.constant 0 : index
    %8 = vector.load %arg2[%7, %c0] : memref<14x300xf32, #tpu.memory_space<vmem>>, vector<1x300xf32>
    %c1_i32 = arith.constant 1 : i32
    %9 = arith.addi %3, %c1_i32 : i32
    %10 = arith.index_cast %9 : i32 to index
    %11 = memref.load %arg1[%10] : memref<16xi32, #tpu.memory_space<smem>>
    %12 = arith.index_cast %11 : i32 to index
    %c0_2 = arith.constant 0 : index
    %13 = vector.load %arg2[%12, %c0_2] : memref<14x300xf32, #tpu.memory_space<vmem>>, vector<1x300xf32>
    %c2_i32_3 = arith.constant 2 : i32
    %14 = arith.addi %3, %c2_i32_3 : i32
    %15 = arith.index_cast %14 : i32 to index
    %16 = memref.load %arg1[%15] : memref<16xi32, #tpu.memory_space<smem>>
    %17 = arith.index_cast %16 : i32 to index
    %c0_4 = arith.constant 0 : index
    %18 = vector.load %arg2[%17, %c0_4] : memref<14x300xf32, #tpu.memory_space<vmem>>, vector<1x300xf32>
    %c3_i32 = arith.constant 3 : i32
    %19 = arith.addi %3, %c3_i32 : i32
    %20 = arith.index_cast %19 : i32 to index
    %21 = memref.load %arg1[%20] : memref<16xi32, #tpu.memory_space<smem>>
    %22 = arith.index_cast %21 : i32 to index
    %c0_5 = arith.constant 0 : index
    %23 = vector.load %arg2[%22, %c0_5] : memref<14x300xf32, #tpu.memory_space<vmem>>, vector<1x300xf32>
    %c4_i32 = arith.constant 4 : i32
    %24 = arith.addi %3, %c4_i32 : i32
    %25 = arith.index_cast %24 : i32 to index
    %26 = memref.load %arg1[%25] : memref<16xi32, #tpu.memory_space<smem>>
    %27 = arith.index_cast %26 : i32 to index
    %c0_6 = arith.constant 0 : index
    %28 = vector.load %arg2[%27, %c0_6] : memref<14x300xf32, #tpu.memory_space<vmem>>, vector<1x300xf32>
    %c5_i32 = arith.constant 5 : i32
    %29 = arith.addi %3, %c5_i32 : i32
    %30 = arith.index_cast %29 : i32 to index
    %31 = memref.load %arg1[%30] : memref<16xi32, #tpu.memory_space<smem>>
    %32 = arith.index_cast %31 : i32 to index
    %c0_7 = arith.constant 0 : index
    %33 = vector.load %arg2[%32, %c0_7] : memref<14x300xf32, #tpu.memory_space<vmem>>, vector<1x300xf32>
    %c6_i32 = arith.constant 6 : i32
    %34 = arith.addi %3, %c6_i32 : i32
    %35 = arith.index_cast %34 : i32 to index
    %36 = memref.load %arg1[%35] : memref<16xi32, #tpu.memory_space<smem>>
    %37 = arith.index_cast %36 : i32 to index
    %c0_8 = arith.constant 0 : index
    %38 = vector.load %arg2[%37, %c0_8] : memref<14x300xf32, #tpu.memory_space<vmem>>, vector<1x300xf32>
    %c7_i32 = arith.constant 7 : i32
    %39 = arith.addi %3, %c7_i32 : i32
    %40 = arith.index_cast %39 : i32 to index
    %41 = memref.load %arg1[%40] : memref<16xi32, #tpu.memory_space<smem>>
    %42 = arith.index_cast %41 : i32 to index
    %c0_9 = arith.constant 0 : index
    %43 = vector.load %arg2[%42, %c0_9] : memref<14x300xf32, #tpu.memory_space<vmem>>, vector<1x300xf32>
    %44 = tpu.concatenate %8, %13, %18, %23, %28, %33, %38, %43 in 0 : vector<1x300xf32>, vector<1x300xf32>, vector<1x300xf32>, vector<1x300xf32>, vector<1x300xf32>, vector<1x300xf32>, vector<1x300xf32>, vector<1x300xf32> -> vector<8x300xf32>
    %c0_10 = arith.constant 0 : index
    %c0_11 = arith.constant 0 : index
    %c0_12 = arith.constant 0 : index
    %45 = vector.load %arg3[%c0_10, %c0_11, %c0_12] : memref<2x8x300xf32, #tpu.memory_space<vmem>>, vector<1x8x300xf32>
    %46 = vector.shape_cast %45 : vector<1x8x300xf32> to vector<8x300xf32>
    %47 = vector.shape_cast %44 : vector<8x300xf32> to vector<1x8x300xf32>
    tpu.vector_store %arg3[%c0_10, %c0_11, %c0_12], %47 {strides = array<i32>} : memref<2x8x300xf32, #tpu.memory_space<vmem>>, vector<1x8x300xf32>,
    %c2_i32_13 = arith.constant 2 : i32
    %48 = arith.muli %arg0, %c2_i32_13 : i32
    %c1_i32_14 = arith.constant 1 : i32
    %49 = arith.addi %48, %c1_i32_14 : i32
    %c8_i32_15 = arith.constant 8 : i32
    %50 = arith.muli %49, %c8_i32_15 : i32
    %c0_i32_16 = arith.constant 0 : i32
    %51 = arith.addi %50, %c0_i32_16 : i32
    %c0_i32_17 = arith.constant 0 : i32
    %52 = arith.addi %51, %c0_i32_17 : i32
    %53 = arith.index_cast %52 : i32 to index
    %54 = memref.load %arg1[%53] : memref<16xi32, #tpu.memory_space<smem>>
    %55 = arith.index_cast %54 : i32 to index
    %c0_18 = arith.constant 0 : index
    %56 = vector.load %arg2[%55, %c0_18] : memref<14x300xf32, #tpu.memory_space<vmem>>, vector<1x300xf32>
    %c1_i32_19 = arith.constant 1 : i32
    %57 = arith.addi %51, %c1_i32_19 : i32
    %58 = arith.index_cast %57 : i32 to index
    %59 = memref.load %arg1[%58] : memref<16xi32, #tpu.memory_space<smem>>
    %60 = arith.index_cast %59 : i32 to index
    %c0_20 = arith.constant 0 : index
    %61 = vector.load %arg2[%60, %c0_20] : memref<14x300xf32, #tpu.memory_space<vmem>>, vector<1x300xf32>
    %c2_i32_21 = arith.constant 2 : i32
    %62 = arith.addi %51, %c2_i32_21 : i32
    %63 = arith.index_cast %62 : i32 to index
    %64 = memref.load %arg1[%63] : memref<16xi32, #tpu.memory_space<smem>>
    %65 = arith.index_cast %64 : i32 to index
    %c0_22 = arith.constant 0 : index
    %66 = vector.load %arg2[%65, %c0_22] : memref<14x300xf32, #tpu.memory_space<vmem>>, vector<1x300xf32>
    %c3_i32_23 = arith.constant 3 : i32
    %67 = arith.addi %51, %c3_i32_23 : i32
    %68 = arith.index_cast %67 : i32 to index
    %69 = memref.load %arg1[%68] : memref<16xi32, #tpu.memory_space<smem>>
    %70 = arith.index_cast %69 : i32 to index
    %c0_24 = arith.constant 0 : index
    %71 = vector.load %arg2[%70, %c0_24] : memref<14x300xf32, #tpu.memory_space<vmem>>, vector<1x300xf32>
    %c4_i32_25 = arith.constant 4 : i32
    %72 = arith.addi %51, %c4_i32_25 : i32
    %73 = arith.index_cast %72 : i32 to index
    %74 = memref.load %arg1[%73] : memref<16xi32, #tpu.memory_space<smem>>
    %75 = arith.index_cast %74 : i32 to index
    %c0_26 = arith.constant 0 : index
    %76 = vector.load %arg2[%75, %c0_26] : memref<14x300xf32, #tpu.memory_space<vmem>>, vector<1x300xf32>
    %c5_i32_27 = arith.constant 5 : i32
    %77 = arith.addi %51, %c5_i32_27 : i32
    %78 = arith.index_cast %77 : i32 to index
    %79 = memref.load %arg1[%78] : memref<16xi32, #tpu.memory_space<smem>>
    %80 = arith.index_cast %79 : i32 to index
    %c0_28 = arith.constant 0 : index
    %81 = vector.load %arg2[%80, %c0_28] : memref<14x300xf32, #tpu.memory_space<vmem>>, vector<1x300xf32>
    %c6_i32_29 = arith.constant 6 : i32
    %82 = arith.addi %51, %c6_i32_29 : i32
    %83 = arith.index_cast %82 : i32 to index
    %84 = memref.load %arg1[%83] : memref<16xi32, #tpu.memory_space<smem>>
    %85 = arith.index_cast %84 : i32 to index
    %c0_30 = arith.constant 0 : index
    %86 = vector.load %arg2[%85, %c0_30] : memref<14x300xf32, #tpu.memory_space<vmem>>, vector<1x300xf32>
    %c7_i32_31 = arith.constant 7 : i32
    %87 = arith.addi %51, %c7_i32_31 : i32
    %88 = arith.index_cast %87 : i32 to index
    %89 = memref.load %arg1[%88] : memref<16xi32, #tpu.memory_space<smem>>
    %90 = arith.index_cast %89 : i32 to index
    %c0_32 = arith.constant 0 : index
    %91 = vector.load %arg2[%90, %c0_32] : memref<14x300xf32, #tpu.memory_space<vmem>>, vector<1x300xf32>
    %92 = tpu.concatenate %56, %61, %66, %71, %76, %81, %86, %91 in 0 : vector<1x300xf32>, vector<1x300xf32>, vector<1x300xf32>, vector<1x300xf32>, vector<1x300xf32>, vector<1x300xf32>, vector<1x300xf32>, vector<1x300xf32> -> vector<8x300xf32>
    %c1 = arith.constant 1 : index
    %c0_33 = arith.constant 0 : index
    %c0_34 = arith.constant 0 : index
    %93 = vector.load %arg3[%c1, %c0_33, %c0_34] : memref<2x8x300xf32, #tpu.memory_space<vmem>>, vector<1x8x300xf32>
    %94 = vector.shape_cast %93 : vector<1x8x300xf32> to vector<8x300xf32>
    %95 = vector.shape_cast %92 : vector<8x300xf32> to vector<1x8x300xf32>
    tpu.vector_store %arg3[%c1, %c0_33, %c0_34], %95 {strides = array<i32>} : memref<2x8x300xf32, #tpu.memory_space<vmem>>, vector<1x8x300xf32>,
    return
  }
  func.func @transform_0(%arg0: i32, %arg1: memref<16xi32, #tpu.memory_space<smem>>) -> (i32, i32) {
    %c0_i32 = arith.constant 0 : i32
    %c0_i32_0 = arith.constant 0 : i32
    %c0_i32_1 = arith.constant 0 : i32
    return %c0_i32, %c0_i32_0 : i32, i32
  }
  func.func @transform_1(%arg0: i32, %arg1: memref<16xi32, #tpu.memory_space<smem>>) -> (i32, i32, i32) {
    %c0_i32 = arith.constant 0 : i32
    %c0_i32_0 = arith.constant 0 : i32
    %c0_i32_1 = arith.constant 0 : i32
    return %arg0, %c0_i32, %c0_i32_0 : i32, i32, i32
  }
}

module attributes {stable_mosaic.version = 11 : i64} {
  func.func @_fasttext_kernel(%arg0: i32, %arg1: memref<16xi32, #tpu.memory_space<smem>>, %arg2: memref<14x300xf32, #tpu.memory_space<vmem>>, %arg3: memref<2x8x300xf32, #tpu.memory_space<vmem>>) attributes {dimension_semantics = [#tpu.dimension_semantics<parallel>], iteration_bounds = array<i64: 1>, scalar_prefetch = 1 : i64, scratch_operands = 0 : i64, tpu.core_type = #tpu.core_type<tc>, window_params = [{pipeline_mode = #tpu.pipeline_mode<synchronous>, transform_indices = @transform_0, window_bounds = array<i64: 14, 300>}, {transform_indices = @transform_1, window_bounds = array<i64: 2, 8, 300>}]} {
    %c2_i32 = arith.constant 2 : i32
    %0 = arith.muli %arg0, %c2_i32 : i32
    %c0_i32 = arith.constant 0 : i32
    %1 = arith.addi %0, %c0_i32 : i32
    %c8_i32 = arith.constant 8 : i32
    %2 = arith.muli %1, %c8_i32 : i32
    %c0_i32_0 = arith.constant 0 : i32
    %3 = arith.addi %2, %c0_i32_0 : i32
    %c0_i32_1 = arith.constant 0 : i32
    %4 = arith.addi %3, %c0_i32_1 : i32
    %5 = arith.index_cast %4 : i32 to index
    %6 = memref.load %arg1[%5] : memref<16xi32, #tpu.memory_space<smem>>
    %7 = arith.index_cast %6 : i32 to index
    %c0 = arith.constant 0 : index
    %8 = vector.load %arg2[%7, %c0] : memref<14x300xf32, #tpu.memory_space<vmem>>, vector<1x300xf32>
    %c1_i32 = arith.constant 1 : i32
    %9 = arith.addi %3, %c1_i32 : i32
    %10 = arith.index_cast %9 : i32 to index
    %11 = memref.load %arg1[%10] : memref<16xi32, #tpu.memory_space<smem>>
    %12 = arith.index_cast %11 : i32 to index
    %c0_2 = arith.constant 0 : index
    %13 = vector.load %arg2[%12, %c0_2] : memref<14x300xf32, #tpu.memory_space<vmem>>, vector<1x300xf32>
    %c2_i32_3 = arith.constant 2 : i32
    %14 = arith.addi %3, %c2_i32_3 : i32
    %15 = arith.index_cast %14 : i32 to index
    %16 = memref.load %arg1[%15] : memref<16xi32, #tpu.memory_space<smem>>
    %17 = arith.index_cast %16 : i32 to index
    %c0_4 = arith.constant 0 : index
    %18 = vector.load %arg2[%17, %c0_4] : memref<14x300xf32, #tpu.memory_space<vmem>>, vector<1x300xf32>
    %c3_i32 = arith.constant 3 : i32
    %19 = arith.addi %3, %c3_i32 : i32
    %20 = arith.index_cast %19 : i32 to index
    %21 = memref.load %arg1[%20] : memref<16xi32, #tpu.memory_space<smem>>
    %22 = arith.index_cast %21 : i32 to index
    %c0_5 = arith.constant 0 : index
    %23 = vector.load %arg2[%22, %c0_5] : memref<14x300xf32, #tpu.memory_space<vmem>>, vector<1x300xf32>
    %c4_i32 = arith.constant 4 : i32
    %24 = arith.addi %3, %c4_i32 : i32
    %25 = arith.index_cast %24 : i32 to index
    %26 = memref.load %arg1[%25] : memref<16xi32, #tpu.memory_space<smem>>
    %27 = arith.index_cast %26 : i32 to index
    %c0_6 = arith.constant 0 : index
    %28 = vector.load %arg2[%27, %c0_6] : memref<14x300xf32, #tpu.memory_space<vmem>>, vector<1x300xf32>
    %c5_i32 = arith.constant 5 : i32
    %29 = arith.addi %3, %c5_i32 : i32
    %30 = arith.index_cast %29 : i32 to index
    %31 = memref.load %arg1[%30] : memref<16xi32, #tpu.memory_space<smem>>
    %32 = arith.index_cast %31 : i32 to index
    %c0_7 = arith.constant 0 : index
    %33 = vector.load %arg2[%32, %c0_7] : memref<14x300xf32, #tpu.memory_space<vmem>>, vector<1x300xf32>
    %c6_i32 = arith.constant 6 : i32
    %34 = arith.addi %3, %c6_i32 : i32
    %35 = arith.index_cast %34 : i32 to index
    %36 = memref.load %arg1[%35] : memref<16xi32, #tpu.memory_space<smem>>
    %37 = arith.index_cast %36 : i32 to index
    %c0_8 = arith.constant 0 : index
    %38 = vector.load %arg2[%37, %c0_8] : memref<14x300xf32, #tpu.memory_space<vmem>>, vector<1x300xf32>
    %c7_i32 = arith.constant 7 : i32
    %39 = arith.addi %3, %c7_i32 : i32
    %40 = arith.index_cast %39 : i32 to index
    %41 = memref.load %arg1[%40] : memref<16xi32, #tpu.memory_space<smem>>
    %42 = arith.index_cast %41 : i32 to index
    %c0_9 = arith.constant 0 : index
    %43 = vector.load %arg2[%42, %c0_9] : memref<14x300xf32, #tpu.memory_space<vmem>>, vector<1x300xf32>
    %44 = tpu.concatenate %8, %13, %18, %23, %28, %33, %38, %43 in 0 : vector<1x300xf32>, vector<1x300xf32>, vector<1x300xf32>, vector<1x300xf32>, vector<1x300xf32>, vector<1x300xf32>, vector<1x300xf32>, vector<1x300xf32> -> vector<8x300xf32>
    %c0_10 = arith.constant 0 : index
    %c0_11 = arith.constant 0 : index
    %c0_12 = arith.constant 0 : index
    %45 = vector.load %arg3[%c0_10, %c0_11, %c0_12] : memref<2x8x300xf32, #tpu.memory_space<vmem>>, vector<1x8x300xf32>
    %46 = vector.shape_cast %45 : vector<1x8x300xf32> to vector<8x300xf32>
    %47 = vector.shape_cast %44 : vector<8x300xf32> to vector<1x8x300xf32>
    tpu.vector_store %arg3[%c0_10, %c0_11, %c0_12], %47 {strides = array<i32>} : memref<2x8x300xf32, #tpu.memory_space<vmem>>, vector<1x8x300xf32>,
    %c2_i32_13 = arith.constant 2 : i32
    %48 = arith.muli %arg0, %c2_i32_13 : i32
    %c1_i32_14 = arith.constant 1 : i32
    %49 = arith.addi %48, %c1_i32_14 : i32
    %c8_i32_15 = arith.constant 8 : i32
    %50 = arith.muli %49, %c8_i32_15 : i32
    %c0_i32_16 = arith.constant 0 : i32
    %51 = arith.addi %50, %c0_i32_16 : i32
    %c0_i32_17 = arith.constant 0 : i32
    %52 = arith.addi %51, %c0_i32_17 : i32
    %53 = arith.index_cast %52 : i32 to index
    %54 = memref.load %arg1[%53] : memref<16xi32, #tpu.memory_space<smem>>
    %55 = arith.index_cast %54 : i32 to index
    %c0_18 = arith.constant 0 : index
    %56 = vector.load %arg2[%55, %c0_18] : memref<14x300xf32, #tpu.memory_space<vmem>>, vector<1x300xf32>
    %c1_i32_19 = arith.constant 1 : i32
    %57 = arith.addi %51, %c1_i32_19 : i32
    %58 = arith.index_cast %57 : i32 to index
    %59 = memref.load %arg1[%58] : memref<16xi32, #tpu.memory_space<smem>>
    %60 = arith.index_cast %59 : i32 to index
    %c0_20 = arith.constant 0 : index
    %61 = vector.load %arg2[%60, %c0_20] : memref<14x300xf32, #tpu.memory_space<vmem>>, vector<1x300xf32>
    %c2_i32_21 = arith.constant 2 : i32
    %62 = arith.addi %51, %c2_i32_21 : i32
    %63 = arith.index_cast %62 : i32 to index
    %64 = memref.load %arg1[%63] : memref<16xi32, #tpu.memory_space<smem>>
    %65 = arith.index_cast %64 : i32 to index
    %c0_22 = arith.constant 0 : index
    %66 = vector.load %arg2[%65, %c0_22] : memref<14x300xf32, #tpu.memory_space<vmem>>, vector<1x300xf32>
    %c3_i32_23 = arith.constant 3 : i32
    %67 = arith.addi %51, %c3_i32_23 : i32
    %68 = arith.index_cast %67 : i32 to index
    %69 = memref.load %arg1[%68] : memref<16xi32, #tpu.memory_space<smem>>
    %70 = arith.index_cast %69 : i32 to index
    %c0_24 = arith.constant 0 : index
    %71 = vector.load %arg2[%70, %c0_24] : memref<14x300xf32, #tpu.memory_space<vmem>>, vector<1x300xf32>
    %c4_i32_25 = arith.constant 4 : i32
    %72 = arith.addi %51, %c4_i32_25 : i32
    %73 = arith.index_cast %72 : i32 to index
    %74 = memref.load %arg1[%73] : memref<16xi32, #tpu.memory_space<smem>>
    %75 = arith.index_cast %74 : i32 to index
    %c0_26 = arith.constant 0 : index
    %76 = vector.load %arg2[%75, %c0_26] : memref<14x300xf32, #tpu.memory_space<vmem>>, vector<1x300xf32>
    %c5_i32_27 = arith.constant 5 : i32
    %77 = arith.addi %51, %c5_i32_27 : i32
    %78 = arith.index_cast %77 : i32 to index
    %79 = memref.load %arg1[%78] : memref<16xi32, #tpu.memory_space<smem>>
    %80 = arith.index_cast %79 : i32 to index
    %c0_28 = arith.constant 0 : index
    %81 = vector.load %arg2[%80, %c0_28] : memref<14x300xf32, #tpu.memory_space<vmem>>, vector<1x300xf32>
    %c6_i32_29 = arith.constant 6 : i32
    %82 = arith.addi %51, %c6_i32_29 : i32
    %83 = arith.index_cast %82 : i32 to index
    %84 = memref.load %arg1[%83] : memref<16xi32, #tpu.memory_space<smem>>
    %85 = arith.index_cast %84 : i32 to index
    %c0_30 = arith.constant 0 : index
    %86 = vector.load %arg2[%85, %c0_30] : memref<14x300xf32, #tpu.memory_space<vmem>>, vector<1x300xf32>
    %c7_i32_31 = arith.constant 7 : i32
    %87 = arith.addi %51, %c7_i32_31 : i32
    %88 = arith.index_cast %87 : i32 to index
    %89 = memref.load %arg1[%88] : memref<16xi32, #tpu.memory_space<smem>>
    %90 = arith.index_cast %89 : i32 to index
    %c0_32 = arith.constant 0 : index
    %91 = vector.load %arg2[%90, %c0_32] : memref<14x300xf32, #tpu.memory_space<vmem>>, vector<1x300xf32>
    %92 = tpu.concatenate %56, %61, %66, %71, %76, %81, %86, %91 in 0 : vector<1x300xf32>, vector<1x300xf32>, vector<1x300xf32>, vector<1x300xf32>, vector<1x300xf32>, vector<1x300xf32>, vector<1x300xf32>, vector<1x300xf32> -> vector<8x300xf32>
    %c1 = arith.constant 1 : index
    %c0_33 = arith.constant 0 : index
    %c0_34 = arith.constant 0 : index
    %93 = vector.load %arg3[%c1, %c0_33, %c0_34] : memref<2x8x300xf32, #tpu.memory_space<vmem>>, vector<1x8x300xf32>
    %94 = vector.shape_cast %93 : vector<1x8x300xf32> to vector<8x300xf32>
    %95 = vector.shape_cast %92 : vector<8x300xf32> to vector<1x8x300xf32>
    tpu.vector_store %arg3[%c1, %c0_33, %c0_34], %95 {strides = array<i32>} : memref<2x8x300xf32, #tpu.memory_space<vmem>>, vector<1x8x300xf32>,
    return
  }
  func.func @transform_0(%arg0: i32, %arg1: memref<16xi32, #tpu.memory_space<smem>>) -> (i32, i32) {
    %c0_i32 = arith.constant 0 : i32
    %c0_i32_0 = arith.constant 0 : i32
    %c0_i32_1 = arith.constant 0 : i32
    return %c0_i32, %c0_i32_0 : i32, i32
  }
  func.func @transform_1(%arg0: i32, %arg1: memref<16xi32, #tpu.memory_space<smem>>) -> (i32, i32, i32) {
    %c0_i32 = arith.constant 0 : i32
    %c0_i32_0 = arith.constant 0 : i32
    %c0_i32_1 = arith.constant 0 : i32
    return %arg0, %c0_i32, %c0_i32_0 : i32, i32, i32
  }
}

</mosaic_0001>

<bundles_post_ra>
// kernel: tpu_custom_call.1
= control target key start
LH: loop header
LB: loop body
LE: loop exit
PB: predicated region body
PF: predicated region fallthrough
CT: control target
= control target key end

     0   :  { %s674_s9 = smov [#allocation3]   ;;  %s859_s0 = inlined_call_operand.hbm [shape: s32[16], index: 0, kind: input, shape index: {}]   ;;  %s860_s1 = inlined_call_operand.hbm [shape: f32[14,300], index: 1, kind: input, shape index: {}]   ;;  %s861_s2 = inlined_call_operand.hbm [shape: f32[2,8,300], index: 2, kind: output, shape index: {}]  }
   0x1   :  { %8 = dma.hbm_to_smem %s859_s0, 16, %s674_s9, [#allocation2] }
   0x2   :  { %668 = dma.done.wait [#allocation2], 16 }
   0x3   :  { %669 = vsyncadd [#allocation2], 4294967280 }
   0x4   :  { %10 = sfence }
   0x5   :  { %11 = vsyncpa [#allocation5], 0 }
   0x6   :  { %12 = vsyncpa [#allocation6], 0  ;;  %s675_s12 = smov [#allocation4]  }
   0x7   :  { %s18_s13 = sshll.u32 %s675_s12, 4  ;;  %s19_s13 = int_to_ptr.vmem [resolvable:$true] %s18_s13 }
   0x8   :  { %s636_s14 = scalar_lea.vmem %s19_s13, 768  ;;  %p641_p1 = scmp.lt.s32.totalorder %s19_s13, %s19_s13 }
   0x9   :  { %p637_p0 = scmp.ne.s32.totalorder %s19_s13, %s636_s14  ;;  %p642_p2 = scmp.lt.s32.totalorder %s636_s14, %s636_s14 }
   0xb   :  { %p643_p3 = por %p642_p2, %p641_p1 }
   0xd   :  { %p644_p4 = pnand %p643_p3, %p637_p0 }
   0xf   :  { %647 = shalt.err (!%p644_p4)
}
  0x10   :  { %s676_s15 = smov 384   ;;  %s677_s16 = smov 24  }
  0x11   :  { %24 = dma.hbm_to_vmem [thread:$0]  %s860_s1, 768, %s19_s13, [#allocation5], %s676_s15, %s676_s15, %s677_s16  }
  0x12   :  { %670 = dma.done.wait [#allocation5], 768  }
  0x13   :  { %671 = vsyncadd [#allocation5], 4294966528  ;;  %s29_s18 = sld [smem:[#allocation3]]  ;;  %v117_v0 = vlaneseq  ;;  %vm244_vm0 = vcmask 1040384   ;;  %vm248_vm1 = vcmask 1041408   ;;  %vm252_vm2 = vcmask 1042432  }
  0x14   :  { %s585_s19 = sld [smem:[#allocation3 + $0x1]]  ;;  %vm256_vm3 = vcmask 1043456   ;;  %vm260_vm4 = vcmask 1044480   ;;  %vm264_vm5 = vcmask 1045504   ;;  %vm268_vm6 = vcmask 1046528  }
  0x15   :  { %s587_s20 = sld [smem:[#allocation3 + $0x2]]  ;;  %v118_v1 = vshrl.u32 %v117_v0, 7  ;;  %vm274_vm7 = vcmask 359424  }
  0x16   :  { %s703_s21 = sld [smem:[#allocation3 + $0x3]] }
  0x17   :  { %s705_s22 = sld [smem:[#allocation3 + $0x4]]  ;;  %v709_v2 = vsub.s32 0, %v118_v1  ;;  %v711_v3 = vsub.s32 1, %v118_v1  ;;  %v713_v5 = vsub.s32 2, %v118_v1 }
  0x18   :  { %s707_s23 = sld [smem:[#allocation3 + $0x5]] }
  0x19   :  { %s30_s24 = sshra.s32 %s29_s18, 3  ;;  %s33_s25 = sand.u32 7, %s29_s18 }
  0x1a   :  { %s584_s26 = smul.u32 24, %s30_s24  ;;  %s41_s27 = sshra.s32 %s585_s19, 3 }
  0x1b   :  { %s44_s1 = sand.u32 7, %s585_s19  ;;  %s586_s28 = smul.u32 24, %s41_s27 }
  0x1c   :  { %s36_s29 = sadd.s32 %s584_s26, %s33_s25  ;;  %s52_s30 = sshra.s32 %s587_s20, 3 }
  0x1d   :  { %s47_s3 = sadd.s32 %s586_s28, %s44_s1  ;;  %s37_s4 = scalar_lea.vmem [#allocation4], %s36_s29 }
  0x1e   :  { %v38_v4 = vld [vmem:[%s37_s4] ss:$8 sm:$0x7]  ;;  %s55_s5 = sand.u32 7, %s587_s20  ;;  %s48_s6 = scalar_lea.vmem [#allocation4], %s47_s3 }
  0x1f   :  { %v49_v6 = vld [vmem:[%s48_s6] ss:$8 sm:$0x7]  ;;  %s588_s7 = smul.u32 24, %s52_s30  ;;  %s63_s8 = sshra.s32 %s703_s21, 3  ;;  %v120_v7 = vrot.slane %v38_v4, %v709_v2  ;;  %v124_v9 = vrot.slane %v38_v4, %v711_v3  ;;  %v128_v11 = vrot.slane %v38_v4, %v713_v5 }
  0x20   :  { %s66_s9 = sand.u32 7, %s703_s21  ;;  %s590_s10 = smul.u32 24, %s63_s8  ;;  %v136_v8 = vrot.slane %v49_v6, %v709_v2  ;;  %v140_v10 = vrot.slane %v49_v6, %v711_v3  ;;  %v144_v12 = vrot.slane %v49_v6, %v713_v5 }
  0x21   :  { %s58_s11 = sadd.s32 %s588_s7, %s55_s5  ;;  %s74_s12 = sshra.s32 %s705_s22, 3 }
  0x22   :  { %s69_s13 = sadd.s32 %s590_s10, %s66_s9  ;;  %s59_s14 = scalar_lea.vmem [#allocation4], %s58_s11  ;;  %v245_v17 = vsel %vm244_vm0, %v120_v7, %v136_v8  ;;  %v246_v18 = vsel %vm244_vm0, %v124_v9, %v140_v10  ;;  %v247_v20 = vsel %vm244_vm0, %v128_v11, %v144_v12 }
  0x23   :  { %v60_v13 = vld [vmem:[%s59_s14] ss:$8 sm:$0x7]  ;;  %s77_s0 = sand.u32 7, %s705_s22  ;;  %s70_s17 = scalar_lea.vmem [#allocation4], %s69_s13 }
  0x24   :  { %v71_v14 = vld [vmem:[%s70_s17] ss:$8 sm:$0x7]  ;;  %s592_s18 = smul.u32 24, %s74_s12  ;;  %s85_s19 = sshra.s32 %s707_s23, 3  ;;  %v152_v15 = vrot.slane %v60_v13, %v709_v2  ;;  %v156_v16 = vrot.slane %v60_v13, %v711_v3  ;;  %v160_v19 = vrot.slane %v60_v13, %v713_v5 }
  0x25   :  { %s88_s20 = sand.u32 7, %s707_s23  ;;  %s594_s21 = smul.u32 24, %s85_s19  ;;  %v168_v21 = vrot.slane %v71_v14, %v709_v2  ;;  %v172_v22 = vrot.slane %v71_v14, %v711_v3  ;;  %v176_v26 = vrot.slane %v71_v14, %v713_v5 }
  0x26   :  { %s80_s24 = sadd.s32 %s592_s18, %s77_s0  ;;  %s732_s25 = sld [smem:[#allocation3 + $0x6]]  ;;  %v249_v24 = vsel %vm248_vm1, %v245_v17, %v152_v15  ;;  %v250_v25 = vsel %vm248_vm1, %v246_v18, %v156_v16  ;;  %v251_v27 = vsel %vm248_vm1, %v247_v20, %v160_v19 }
  0x27   :  { %s91_s22 = sadd.s32 %s594_s21, %s88_s20  ;;  %s81_s23 = scalar_lea.vmem [#allocation4], %s80_s24  ;;  %v253_v31 = vsel %vm252_vm2, %v249_v24, %v168_v21  ;;  %v254_v32 = vsel %vm252_vm2, %v250_v25, %v172_v22  ;;  %v255_v34 = vsel %vm252_vm2, %v251_v27, %v176_v26 }
  0x28   :  { %v82_v23 = vld [vmem:[%s81_s23] ss:$8 sm:$0x7]  ;;  %s737_s26 = sld [smem:[#allocation3 + $0x7]]  ;;  %s92_s1 = scalar_lea.vmem [#allocation4], %s91_s22 }
  0x29   :  { %s743_s27 = sld [smem:[#allocation3 + $0x8]]  ;;  %v93_v28 = vld [vmem:[%s92_s1] ss:$8 sm:$0x7]  ;;  %v184_v29 = vrot.slane %v82_v23, %v709_v2  ;;  %v188_v30 = vrot.slane %v82_v23, %v711_v3  ;;  %v192_v33 = vrot.slane %v82_v23, %v713_v5 }
  0x2a   :  { %s747_s28 = sld [smem:[#allocation3 + $0x9]]  ;;  %v200_v35 = vrot.slane %v93_v28, %v709_v2  ;;  %v204_v36 = vrot.slane %v93_v28, %v711_v3  ;;  %v208_v39 = vrot.slane %v93_v28, %v713_v5 }
  0x2b   :  { %s752_s29 = sld [smem:[#allocation3 + $0xa]]  ;;  %v257_v37 = vsel %vm256_vm3, %v253_v31, %v184_v29  ;;  %v258_v38 = vsel %vm256_vm3, %v254_v32, %v188_v30  ;;  %v259_v40 = vsel %vm256_vm3, %v255_v34, %v192_v33 }
  0x2c   :  { %s96_s30 = sshra.s32 %s732_s25, 3  ;;  %s99_s3 = sand.u32 7, %s732_s25  ;;  %v261_v42 = vsel %vm260_vm4, %v257_v37, %v200_v35  ;;  %v262_v43 = vsel %vm260_vm4, %v258_v38, %v204_v36  ;;  %v263_v47 = vsel %vm260_vm4, %v259_v40, %v208_v39 }
  0x2d   :  { %s596_s4 = smul.u32 24, %s96_s30  ;;  %s759_s5 = sld [smem:[#allocation3 + $0xb]] }
  0x2e   :  { %s107_s6 = sshra.s32 %s737_s26, 3  ;;  %s110_s7 = sand.u32 7, %s737_s26 }
  0x2f   :  { %s102_s8 = sadd.s32 %s596_s4, %s99_s3  ;;  %s598_s9 = smul.u32 24, %s107_s6 }
  0x30   :  { %s280_s10 = sshra.s32 %s743_s27, 3  ;;  %s103_s11 = scalar_lea.vmem [#allocation4], %s102_s8 }
  0x31   :  { %v104_v41 = vld [vmem:[%s103_s11] ss:$8 sm:$0x7]  ;;  %s113_s12 = sadd.s32 %s598_s9, %s110_s7  ;;  %s283_s13 = sand.u32 7, %s743_s27 }
  0x32   :  { %v216_v44 = vrot.slane %v104_v41, %v709_v2  ;;  %v220_v45 = vrot.slane %v104_v41, %v711_v3  ;;  %v224_v46 = vrot.slane %v104_v41, %v713_v5  ;;  %s600_s14 = smul.u32 24, %s280_s10  ;;  %s114_s0 = scalar_lea.vmem [#allocation4], %s113_s12 }
  0x33   :  { %v115_v48 = vld [vmem:[%s114_s0] ss:$8 sm:$0x7]  ;;  %s291_s17 = sshra.s32 %s747_s28, 3  ;;  %s294_s18 = sand.u32 7, %s747_s28 }
  0x34   :  { %v232_v49 = vrot.slane %v115_v48, %v709_v2  ;;  %v265_v50 = vsel %vm264_vm5, %v261_v42, %v216_v44  ;;  %v236_v51 = vrot.slane %v115_v48, %v711_v3  ;;  %v266_v52 = vsel %vm264_vm5, %v262_v43, %v220_v45  ;;  %s286_s19 = sadd.s32 %s600_s14, %s283_s13  ;;  %s602_s20 = smul.u32 24, %s291_s17 }
  0x35   :  { %v240_v53 = vrot.slane %v115_v48, %v713_v5  ;;  %v267_v54 = vsel %vm264_vm5, %v263_v47, %v224_v46  ;;  %s302_s21 = sshra.s32 %s752_s29, 3  ;;  %s305_s25 = sand.u32 7, %s752_s29 }
  0x36   :  { %v269_v55 = vsel %vm268_vm6, %v265_v50, %v232_v49  ;;  %v270_v56 = vsel %vm268_vm6, %v266_v52, %v236_v51  ;;  %s297_s24 = sadd.s32 %s602_s20, %s294_s18  ;;  %s287_s22 = scalar_lea.vmem [#allocation4], %s286_s19 }
  0x37   :  { %272 = vst [vmem:[#allocation7] sm:$0xff] %v269_v55  ;;  %273 = vst [vmem:[#allocation7 + $0x8] sm:$0xff] %v270_v56  ;;  %v271_v57 = vsel %vm268_vm6, %v267_v54, %v240_v53  ;;  %v288_v58 = vld [vmem:[%s287_s22] ss:$8 sm:$0x7]  ;;  %s604_s23 = smul.u32 24, %s302_s21 }
  0x38   :  { %275 = vst.msk [vmem:[#allocation7 + $0x10] sm:$0xff] %vm274_vm7, %v271_v57  ;;  %s298_s26 = scalar_lea.vmem [#allocation4], %s297_s24  ;;  %s313_s27 = sshra.s32 %s759_s5, 3  ;;  %v370_v60 = vrot.slane %v288_v58, %v709_v2  ;;  %v374_v61 = vrot.slane %v288_v58, %v711_v3  ;;  %v378_v1 = vrot.slane %v288_v58, %v713_v5 }
  0x39   :  { %v299_v59 = vld [vmem:[%s298_s26] ss:$8 sm:$0x7]  ;;  %s316_s1 = sand.u32 7, %s759_s5  ;;  %s308_s28 = sadd.s32 %s604_s23, %s305_s25 }
  0x3a   :  { %s606_s30 = smul.u32 24, %s313_s27  ;;  %s791_s3 = sld [smem:[#allocation3 + $0xc]]  ;;  %v386_v63 = vrot.slane %v299_v59, %v709_v2  ;;  %v390_v0 = vrot.slane %v299_v59, %v711_v3  ;;  %v394_v4 = vrot.slane %v299_v59, %v713_v5 }
  0x3b   :  { %s309_s29 = scalar_lea.vmem [#allocation4], %s308_s28  ;;  %s795_s6 = sld [smem:[#allocation3 + $0xd]] }
  0x3c   :  { %v310_v62 = vld [vmem:[%s309_s29] ss:$8 sm:$0x7]  ;;  %s319_s4 = sadd.s32 %s606_s30, %s316_s1  ;;  %s801_s5 = sld [smem:[#allocation3 + $0xe]]  ;;  %v494_v10 = vsel %vm244_vm0, %v370_v60, %v386_v63  ;;  %v495_v11 = vsel %vm244_vm0, %v374_v61, %v390_v0  ;;  %v496_v12 = vsel %vm244_vm0, %v378_v1, %v394_v4 }
  0x3d   :  { %s320_s7 = scalar_lea.vmem [#allocation4], %s319_s4  ;;  %s803_s8 = sld [smem:[#allocation3 + $0xf]]  ;;  %v402_v7 = vrot.slane %v310_v62, %v709_v2  ;;  %v406_v8 = vrot.slane %v310_v62, %v711_v3  ;;  %v410_v9 = vrot.slane %v310_v62, %v713_v5 }
  0x3e   :  { %v321_v6 = vld [vmem:[%s320_s7] ss:$8 sm:$0x7]  ;;  %s678_s28 = smov [#allocation7]  }
  0x3f   :  { %v418_v13 = vrot.slane %v321_v6, %v709_v2  ;;  %v422_v14 = vrot.slane %v321_v6, %v711_v3  ;;  %v426_v15 = vrot.slane %v321_v6, %v713_v5  ;;  %v497_v16 = vsel %vm248_vm1, %v494_v10, %v402_v7  ;;  %s524_s30 = sshll.u32 %s678_s28, 4  ;;  %s525_s30 = int_to_ptr.vmem [resolvable:$true] %s524_s30 }
  0x40   :  { %s324_s9 = sshra.s32 %s791_s3, 3  ;;  %s327_s10 = sand.u32 7, %s791_s3  ;;  %v498_v17 = vsel %vm248_vm1, %v495_v11, %v406_v8  ;;  %v499_v18 = vsel %vm248_vm1, %v496_v12, %v410_v9 }
  0x41   :  { %s608_s11 = smul.u32 24, %s324_s9  ;;  %s335_s12 = sshra.s32 %s795_s6, 3  ;;  %v500_v20 = vsel %vm252_vm2, %v497_v16, %v418_v13  ;;  %v501_v21 = vsel %vm252_vm2, %v498_v17, %v422_v14  ;;  %v502_v22 = vsel %vm252_vm2, %v499_v18, %v426_v15 }
  0x42   :  { %s338_s13 = sand.u32 7, %s795_s6  ;;  %s610_s14 = smul.u32 24, %s335_s12 }
  0x43   :  { %s330_s0 = sadd.s32 %s608_s11, %s327_s10  ;;  %s346_s17 = sshra.s32 %s801_s5, 3 }
  0x44   :  { %s341_s18 = sadd.s32 %s610_s14, %s338_s13  ;;  %s331_s19 = scalar_lea.vmem [#allocation4], %s330_s0 }
  0x45   :  { %v332_v19 = vld [vmem:[%s331_s19] ss:$8 sm:$0x7]  ;;  %s349_s20 = sand.u32 7, %s801_s5  ;;  %s342_s21 = scalar_lea.vmem [#allocation4], %s341_s18 }
  0x46   :  { %v343_v23 = vld [vmem:[%s342_s21] ss:$8 sm:$0x7]  ;;  %s612_s24 = smul.u32 24, %s346_s17  ;;  %s357_s25 = sshra.s32 %s803_s8, 3  ;;  %v434_v24 = vrot.slane %v332_v19, %v709_v2  ;;  %v438_v25 = vrot.slane %v332_v19, %v711_v3  ;;  %v442_v26 = vrot.slane %v332_v19, %v713_v5 }
  0x47   :  { %s360_s22 = sand.u32 7, %s803_s8  ;;  %s614_s23 = smul.u32 24, %s357_s25  ;;  %v450_v27 = vrot.slane %v343_v23, %v709_v2  ;;  %v454_v28 = vrot.slane %v343_v23, %v711_v3  ;;  %v458_v29 = vrot.slane %v343_v23, %v713_v5 }
  0x48   :  { %s352_s26 = sadd.s32 %s612_s24, %s349_s20  ;;  %v503_v30 = vsel %vm256_vm3, %v500_v20, %v434_v24  ;;  %v504_v31 = vsel %vm256_vm3, %v501_v21, %v438_v25  ;;  %v505_v32 = vsel %vm256_vm3, %v502_v22, %v442_v26  ;;  %s648_s29 = scalar_lea.vmem %s525_s30, 768 }
  0x49   :  { %s363_s27 = sadd.s32 %s614_s23, %s360_s22  ;;  %s353_s1 = scalar_lea.vmem [#allocation4], %s352_s26  ;;  %v506_v34 = vsel %vm260_vm4, %v503_v30, %v450_v27  ;;  %v507_v35 = vsel %vm260_vm4, %v504_v31, %v454_v28  ;;  %v508_v36 = vsel %vm260_vm4, %v505_v32, %v458_v29 }
  0x4a   :  { %v354_v33 = vld [vmem:[%s353_s1] ss:$8 sm:$0x7]  ;;  %s364_s3 = scalar_lea.vmem [#allocation4], %s363_s27  ;;  %p649_p5 = scmp.ne.s32.totalorder %s525_s30, %s648_s29 }
  0x4b   :  { %v365_v37 = vld [vmem:[%s364_s3] ss:$8 sm:$0x7]  ;;  %v466_v38 = vrot.slane %v354_v33, %v709_v2  ;;  %v470_v39 = vrot.slane %v354_v33, %v711_v3  ;;  %v474_v40 = vrot.slane %v354_v33, %v713_v5  ;;  %p653_p6 = scmp.lt.s32.totalorder %s525_s30, %s525_s30  ;;  %p654_p7 = scmp.lt.s32.totalorder %s648_s29, %s648_s29 }
  0x4c   :  { %v482_v41 = vrot.slane %v365_v37, %v709_v2  ;;  %v486_v42 = vrot.slane %v365_v37, %v711_v3  ;;  %v490_v43 = vrot.slane %v365_v37, %v713_v5 }
  0x4d   :  { %v509_v44 = vsel %vm264_vm5, %v506_v34, %v466_v38  ;;  %v510_v45 = vsel %vm264_vm5, %v507_v35, %v470_v39  ;;  %v511_v46 = vsel %vm264_vm5, %v508_v36, %v474_v40  ;;  %p655_p8 = por %p654_p7, %p653_p6 }
  0x4e   :  { %v512_v47 = vsel %vm268_vm6, %v509_v44, %v482_v41  ;;  %v513_v48 = vsel %vm268_vm6, %v510_v45, %v486_v42  ;;  %v514_v49 = vsel %vm268_vm6, %v511_v46, %v490_v43 }
  0x4f   :  { %516 = vst [vmem:[#allocation7 + $0x18] sm:$0xff] %v512_v47  ;;  %517 = vst [vmem:[#allocation7 + $0x20] sm:$0xff] %v513_v48  ;;  %p656_p9 = pnand %p655_p8, %p649_p5 }
  0x50   :  { %518 = vst.msk [vmem:[#allocation7 + $0x28] sm:$0xff] %vm274_vm7, %v514_v49 }
  0x51   :  { %659 = shalt.err (!%p656_p9)
}
  0x52   :  { %530 = dma.vmem_to_hbm [thread:$0]  %s525_s30, 768, %s861_s2, [#allocation6], %s676_s15, %s676_s15, %s677_s16  }
  0x53   :  { %672 = dma.done.wait [#allocation6], 768  }
  0x54   :  { %673 = vsyncadd [#allocation6], 4294966528 }
  0x55   :  { %534 = vsyncpa [#allocation5], 1 }
  0x56   :  { %535 = vsyncpa [#allocation6], 1 }

// kernel: tpu_custom_call.1
= control target key start
LH: loop header
LB: loop body
LE: loop exit
PB: predicated region body
PF: predicated region fallthrough
CT: control target
= control target key end

     0   :  { %s674_s9 = smov [#allocation3]   ;;  %s859_s0 = inlined_call_operand.hbm [shape: s32[16], index: 0, kind: input, shape index: {}]   ;;  %s860_s1 = inlined_call_operand.hbm [shape: f32[14,300], index: 1, kind: input, shape index: {}]   ;;  %s861_s2 = inlined_call_operand.hbm [shape: f32[2,8,300], index: 2, kind: output, shape index: {}]  }
   0x1   :  { %8 = dma.hbm_to_smem %s859_s0, 16, %s674_s9, [#allocation2] }
   0x2   :  { %668 = dma.done.wait [#allocation2], 16 }
   0x3   :  { %669 = vsyncadd [#allocation2], 4294967280 }
   0x4   :  { %10 = sfence }
   0x5   :  { %11 = vsyncpa [#allocation5], 0 }
   0x6   :  { %12 = vsyncpa [#allocation6], 0  ;;  %s675_s12 = smov [#allocation4]  }
   0x7   :  { %s18_s13 = sshll.u32 %s675_s12, 4  ;;  %s19_s13 = int_to_ptr.vmem [resolvable:$true] %s18_s13 }
   0x8   :  { %s636_s14 = scalar_lea.vmem %s19_s13, 768  ;;  %p641_p1 = scmp.lt.s32.totalorder %s19_s13, %s19_s13 }
   0x9   :  { %p637_p0 = scmp.ne.s32.totalorder %s19_s13, %s636_s14  ;;  %p642_p2 = scmp.lt.s32.totalorder %s636_s14, %s636_s14 }
   0xb   :  { %p643_p3 = por %p642_p2, %p641_p1 }
   0xd   :  { %p644_p4 = pnand %p643_p3, %p637_p0 }
   0xf   :  { %647 = shalt.err (!%p644_p4)
}
  0x10   :  { %s676_s15 = smov 384   ;;  %s677_s16 = smov 24  }
  0x11   :  { %24 = dma.hbm_to_vmem [thread:$0]  %s860_s1, 768, %s19_s13, [#allocation5], %s676_s15, %s676_s15, %s677_s16  }
  0x12   :  { %670 = dma.done.wait [#allocation5], 768  }
  0x13   :  { %671 = vsyncadd [#allocation5], 4294966528  ;;  %s29_s18 = sld [smem:[#allocation3]]  ;;  %v117_v0 = vlaneseq  ;;  %vm244_vm0 = vcmask 1040384   ;;  %vm248_vm1 = vcmask 1041408   ;;  %vm252_vm2 = vcmask 1042432  }
  0x14   :  { %s585_s19 = sld [smem:[#allocation3 + $0x1]]  ;;  %vm256_vm3 = vcmask 1043456   ;;  %vm260_vm4 = vcmask 1044480   ;;  %vm264_vm5 = vcmask 1045504   ;;  %vm268_vm6 = vcmask 1046528  }
  0x15   :  { %s587_s20 = sld [smem:[#allocation3 + $0x2]]  ;;  %v118_v1 = vshrl.u32 %v117_v0, 7  ;;  %vm274_vm7 = vcmask 359424  }
  0x16   :  { %s703_s21 = sld [smem:[#allocation3 + $0x3]] }
  0x17   :  { %s705_s22 = sld [smem:[#allocation3 + $0x4]]  ;;  %v709_v2 = vsub.s32 0, %v118_v1  ;;  %v711_v3 = vsub.s32 1, %v118_v1  ;;  %v713_v5 = vsub.s32 2, %v118_v1 }
  0x18   :  { %s707_s23 = sld [smem:[#allocation3 + $0x5]] }
  0x19   :  { %s30_s24 = sshra.s32 %s29_s18, 3  ;;  %s33_s25 = sand.u32 7, %s29_s18 }
  0x1a   :  { %s584_s26 = smul.u32 24, %s30_s24  ;;  %s41_s27 = sshra.s32 %s585_s19, 3 }
  0x1b   :  { %s44_s1 = sand.u32 7, %s585_s19  ;;  %s586_s28 = smul.u32 24, %s41_s27 }
  0x1c   :  { %s36_s29 = sadd.s32 %s584_s26, %s33_s25  ;;  %s52_s30 = sshra.s32 %s587_s20, 3 }
  0x1d   :  { %s47_s3 = sadd.s32 %s586_s28, %s44_s1  ;;  %s37_s4 = scalar_lea.vmem [#allocation4], %s36_s29 }
  0x1e   :  { %v38_v4 = vld [vmem:[%s37_s4] ss:$8 sm:$0x7]  ;;  %s55_s5 = sand.u32 7, %s587_s20  ;;  %s48_s6 = scalar_lea.vmem [#allocation4], %s47_s3 }
  0x1f   :  { %v49_v6 = vld [vmem:[%s48_s6] ss:$8 sm:$0x7]  ;;  %s588_s7 = smul.u32 24, %s52_s30  ;;  %s63_s8 = sshra.s32 %s703_s21, 3  ;;  %v120_v7 = vrot.slane %v38_v4, %v709_v2  ;;  %v124_v9 = vrot.slane %v38_v4, %v711_v3  ;;  %v128_v11 = vrot.slane %v38_v4, %v713_v5 }
  0x20   :  { %s66_s9 = sand.u32 7, %s703_s21  ;;  %s590_s10 = smul.u32 24, %s63_s8  ;;  %v136_v8 = vrot.slane %v49_v6, %v709_v2  ;;  %v140_v10 = vrot.slane %v49_v6, %v711_v3  ;;  %v144_v12 = vrot.slane %v49_v6, %v713_v5 }
  0x21   :  { %s58_s11 = sadd.s32 %s588_s7, %s55_s5  ;;  %s74_s12 = sshra.s32 %s705_s22, 3 }
  0x22   :  { %s69_s13 = sadd.s32 %s590_s10, %s66_s9  ;;  %s59_s14 = scalar_lea.vmem [#allocation4], %s58_s11  ;;  %v245_v17 = vsel %vm244_vm0, %v120_v7, %v136_v8  ;;  %v246_v18 = vsel %vm244_vm0, %v124_v9, %v140_v10  ;;  %v247_v20 = vsel %vm244_vm0, %v128_v11, %v144_v12 }
  0x23   :  { %v60_v13 = vld [vmem:[%s59_s14] ss:$8 sm:$0x7]  ;;  %s77_s0 = sand.u32 7, %s705_s22  ;;  %s70_s17 = scalar_lea.vmem [#allocation4], %s69_s13 }
  0x24   :  { %v71_v14 = vld [vmem:[%s70_s17] ss:$8 sm:$0x7]  ;;  %s592_s18 = smul.u32 24, %s74_s12  ;;  %s85_s19 = sshra.s32 %s707_s23, 3  ;;  %v152_v15 = vrot.slane %v60_v13, %v709_v2  ;;  %v156_v16 = vrot.slane %v60_v13, %v711_v3  ;;  %v160_v19 = vrot.slane %v60_v13, %v713_v5 }
  0x25   :  { %s88_s20 = sand.u32 7, %s707_s23  ;;  %s594_s21 = smul.u32 24, %s85_s19  ;;  %v168_v21 = vrot.slane %v71_v14, %v709_v2  ;;  %v172_v22 = vrot.slane %v71_v14, %v711_v3  ;;  %v176_v26 = vrot.slane %v71_v14, %v713_v5 }
  0x26   :  { %s80_s24 = sadd.s32 %s592_s18, %s77_s0  ;;  %s732_s25 = sld [smem:[#allocation3 + $0x6]]  ;;  %v249_v24 = vsel %vm248_vm1, %v245_v17, %v152_v15  ;;  %v250_v25 = vsel %vm248_vm1, %v246_v18, %v156_v16  ;;  %v251_v27 = vsel %vm248_vm1, %v247_v20, %v160_v19 }
  0x27   :  { %s91_s22 = sadd.s32 %s594_s21, %s88_s20  ;;  %s81_s23 = scalar_lea.vmem [#allocation4], %s80_s24  ;;  %v253_v31 = vsel %vm252_vm2, %v249_v24, %v168_v21  ;;  %v254_v32 = vsel %vm252_vm2, %v250_v25, %v172_v22  ;;  %v255_v34 = vsel %vm252_vm2, %v251_v27, %v176_v26 }
  0x28   :  { %v82_v23 = vld [vmem:[%s81_s23] ss:$8 sm:$0x7]  ;;  %s737_s26 = sld [smem:[#allocation3 + $0x7]]  ;;  %s92_s1 = scalar_lea.vmem [#allocation4], %s91_s22 }
  0x29   :  { %s743_s27 = sld [smem:[#allocation3 + $0x8]]  ;;  %v93_v28 = vld [vmem:[%s92_s1] ss:$8 sm:$0x7]  ;;  %v184_v29 = vrot.slane %v82_v23, %v709_v2  ;;  %v188_v30 = vrot.slane %v82_v23, %v711_v3  ;;  %v192_v33 = vrot.slane %v82_v23, %v713_v5 }
  0x2a   :  { %s747_s28 = sld [smem:[#allocation3 + $0x9]]  ;;  %v200_v35 = vrot.slane %v93_v28, %v709_v2  ;;  %v204_v36 = vrot.slane %v93_v28, %v711_v3  ;;  %v208_v39 = vrot.slane %v93_v28, %v713_v5 }
  0x2b   :  { %s752_s29 = sld [smem:[#allocation3 + $0xa]]  ;;  %v257_v37 = vsel %vm256_vm3, %v253_v31, %v184_v29  ;;  %v258_v38 = vsel %vm256_vm3, %v254_v32, %v188_v30  ;;  %v259_v40 = vsel %vm256_vm3, %v255_v34, %v192_v33 }
  0x2c   :  { %s96_s30 = sshra.s32 %s732_s25, 3  ;;  %s99_s3 = sand.u32 7, %s732_s25  ;;  %v261_v42 = vsel %vm260_vm4, %v257_v37, %v200_v35  ;;  %v262_v43 = vsel %vm260_vm4, %v258_v38, %v204_v36  ;;  %v263_v47 = vsel %vm260_vm4, %v259_v40, %v208_v39 }
  0x2d   :  { %s596_s4 = smul.u32 24, %s96_s30  ;;  %s759_s5 = sld [smem:[#allocation3 + $0xb]] }
  0x2e   :  { %s107_s6 = sshra.s32 %s737_s26, 3  ;;  %s110_s7 = sand.u32 7, %s737_s26 }
  0x2f   :  { %s102_s8 = sadd.s32 %s596_s4, %s99_s3  ;;  %s598_s9 = smul.u32 24, %s107_s6 }
  0x30   :  { %s280_s10 = sshra.s32 %s743_s27, 3  ;;  %s103_s11 = scalar_lea.vmem [#allocation4], %s102_s8 }
  0x31   :  { %v104_v41 = vld [vmem:[%s103_s11] ss:$8 sm:$0x7]  ;;  %s113_s12 = sadd.s32 %s598_s9, %s110_s7  ;;  %s283_s13 = sand.u32 7, %s743_s27 }
  0x32   :  { %v216_v44 = vrot.slane %v104_v41, %v709_v2  ;;  %v220_v45 = vrot.slane %v104_v41, %v711_v3  ;;  %v224_v46 = vrot.slane %v104_v41, %v713_v5  ;;  %s600_s14 = smul.u32 24, %s280_s10  ;;  %s114_s0 = scalar_lea.vmem [#allocation4], %s113_s12 }
  0x33   :  { %v115_v48 = vld [vmem:[%s114_s0] ss:$8 sm:$0x7]  ;;  %s291_s17 = sshra.s32 %s747_s28, 3  ;;  %s294_s18 = sand.u32 7, %s747_s28 }
  0x34   :  { %v232_v49 = vrot.slane %v115_v48, %v709_v2  ;;  %v265_v50 = vsel %vm264_vm5, %v261_v42, %v216_v44  ;;  %v236_v51 = vrot.slane %v115_v48, %v711_v3  ;;  %v266_v52 = vsel %vm264_vm5, %v262_v43, %v220_v45  ;;  %s286_s19 = sadd.s32 %s600_s14, %s283_s13  ;;  %s602_s20 = smul.u32 24, %s291_s17 }
  0x35   :  { %v240_v53 = vrot.slane %v115_v48, %v713_v5  ;;  %v267_v54 = vsel %vm264_vm5, %v263_v47, %v224_v46  ;;  %s302_s21 = sshra.s32 %s752_s29, 3  ;;  %s305_s25 = sand.u32 7, %s752_s29 }
  0x36   :  { %v269_v55 = vsel %vm268_vm6, %v265_v50, %v232_v49  ;;  %v270_v56 = vsel %vm268_vm6, %v266_v52, %v236_v51  ;;  %s297_s24 = sadd.s32 %s602_s20, %s294_s18  ;;  %s287_s22 = scalar_lea.vmem [#allocation4], %s286_s19 }
  0x37   :  { %272 = vst [vmem:[#allocation7] sm:$0xff] %v269_v55  ;;  %273 = vst [vmem:[#allocation7 + $0x8] sm:$0xff] %v270_v56  ;;  %v271_v57 = vsel %vm268_vm6, %v267_v54, %v240_v53  ;;  %v288_v58 = vld [vmem:[%s287_s22] ss:$8 sm:$0x7]  ;;  %s604_s23 = smul.u32 24, %s302_s21 }
  0x38   :  { %275 = vst.msk [vmem:[#allocation7 + $0x10] sm:$0xff] %vm274_vm7, %v271_v57  ;;  %s298_s26 = scalar_lea.vmem [#allocation4], %s297_s24  ;;  %s313_s27 = sshra.s32 %s759_s5, 3  ;;  %v370_v60 = vrot.slane %v288_v58, %v709_v2  ;;  %v374_v61 = vrot.slane %v288_v58, %v711_v3  ;;  %v378_v1 = vrot.slane %v288_v58, %v713_v5 }
  0x39   :  { %v299_v59 = vld [vmem:[%s298_s26] ss:$8 sm:$0x7]  ;;  %s316_s1 = sand.u32 7, %s759_s5  ;;  %s308_s28 = sadd.s32 %s604_s23, %s305_s25 }
  0x3a   :  { %s606_s30 = smul.u32 24, %s313_s27  ;;  %s791_s3 = sld [smem:[#allocation3 + $0xc]]  ;;  %v386_v63 = vrot.slane %v299_v59, %v709_v2  ;;  %v390_v0 = vrot.slane %v299_v59, %v711_v3  ;;  %v394_v4 = vrot.slane %v299_v59, %v713_v5 }
  0x3b   :  { %s309_s29 = scalar_lea.vmem [#allocation4], %s308_s28  ;;  %s795_s6 = sld [smem:[#allocation3 + $0xd]] }
  0x3c   :  { %v310_v62 = vld [vmem:[%s309_s29] ss:$8 sm:$0x7]  ;;  %s319_s4 = sadd.s32 %s606_s30, %s316_s1  ;;  %s801_s5 = sld [smem:[#allocation3 + $0xe]]  ;;  %v494_v10 = vsel %vm244_vm0, %v370_v60, %v386_v63  ;;  %v495_v11 = vsel %vm244_vm0, %v374_v61, %v390_v0  ;;  %v496_v12 = vsel %vm244_vm0, %v378_v1, %v394_v4 }
  0x3d   :  { %s320_s7 = scalar_lea.vmem [#allocation4], %s319_s4  ;;  %s803_s8 = sld [smem:[#allocation3 + $0xf]]  ;;  %v402_v7 = vrot.slane %v310_v62, %v709_v2  ;;  %v406_v8 = vrot.slane %v310_v62, %v711_v3  ;;  %v410_v9 = vrot.slane %v310_v62, %v713_v5 }
  0x3e   :  { %v321_v6 = vld [vmem:[%s320_s7] ss:$8 sm:$0x7]  ;;  %s678_s28 = smov [#allocation7]  }
  0x3f   :  { %v418_v13 = vrot.slane %v321_v6, %v709_v2  ;;  %v422_v14 = vrot.slane %v321_v6, %v711_v3  ;;  %v426_v15 = vrot.slane %v321_v6, %v713_v5  ;;  %v497_v16 = vsel %vm248_vm1, %v494_v10, %v402_v7  ;;  %s524_s30 = sshll.u32 %s678_s28, 4  ;;  %s525_s30 = int_to_ptr.vmem [resolvable:$true] %s524_s30 }
  0x40   :  { %s324_s9 = sshra.s32 %s791_s3, 3  ;;  %s327_s10 = sand.u32 7, %s791_s3  ;;  %v498_v17 = vsel %vm248_vm1, %v495_v11, %v406_v8  ;;  %v499_v18 = vsel %vm248_vm1, %v496_v12, %v410_v9 }
  0x41   :  { %s608_s11 = smul.u32 24, %s324_s9  ;;  %s335_s12 = sshra.s32 %s795_s6, 3  ;;  %v500_v20 = vsel %vm252_vm2, %v497_v16, %v418_v13  ;;  %v501_v21 = vsel %vm252_vm2, %v498_v17, %v422_v14  ;;  %v502_v22 = vsel %vm252_vm2, %v499_v18, %v426_v15 }
  0x42   :  { %s338_s13 = sand.u32 7, %s795_s6  ;;  %s610_s14 = smul.u32 24, %s335_s12 }
  0x43   :  { %s330_s0 = sadd.s32 %s608_s11, %s327_s10  ;;  %s346_s17 = sshra.s32 %s801_s5, 3 }
  0x44   :  { %s341_s18 = sadd.s32 %s610_s14, %s338_s13  ;;  %s331_s19 = scalar_lea.vmem [#allocation4], %s330_s0 }
  0x45   :  { %v332_v19 = vld [vmem:[%s331_s19] ss:$8 sm:$0x7]  ;;  %s349_s20 = sand.u32 7, %s801_s5  ;;  %s342_s21 = scalar_lea.vmem [#allocation4], %s341_s18 }
  0x46   :  { %v343_v23 = vld [vmem:[%s342_s21] ss:$8 sm:$0x7]  ;;  %s612_s24 = smul.u32 24, %s346_s17  ;;  %s357_s25 = sshra.s32 %s803_s8, 3  ;;  %v434_v24 = vrot.slane %v332_v19, %v709_v2  ;;  %v438_v25 = vrot.slane %v332_v19, %v711_v3  ;;  %v442_v26 = vrot.slane %v332_v19, %v713_v5 }
  0x47   :  { %s360_s22 = sand.u32 7, %s803_s8  ;;  %s614_s23 = smul.u32 24, %s357_s25  ;;  %v450_v27 = vrot.slane %v343_v23, %v709_v2  ;;  %v454_v28 = vrot.slane %v343_v23, %v711_v3  ;;  %v458_v29 = vrot.slane %v343_v23, %v713_v5 }
  0x48   :  { %s352_s26 = sadd.s32 %s612_s24, %s349_s20  ;;  %v503_v30 = vsel %vm256_vm3, %v500_v20, %v434_v24  ;;  %v504_v31 = vsel %vm256_vm3, %v501_v21, %v438_v25  ;;  %v505_v32 = vsel %vm256_vm3, %v502_v22, %v442_v26  ;;  %s648_s29 = scalar_lea.vmem %s525_s30, 768 }
  0x49   :  { %s363_s27 = sadd.s32 %s614_s23, %s360_s22  ;;  %s353_s1 = scalar_lea.vmem [#allocation4], %s352_s26  ;;  %v506_v34 = vsel %vm260_vm4, %v503_v30, %v450_v27  ;;  %v507_v35 = vsel %vm260_vm4, %v504_v31, %v454_v28  ;;  %v508_v36 = vsel %vm260_vm4, %v505_v32, %v458_v29 }
  0x4a   :  { %v354_v33 = vld [vmem:[%s353_s1] ss:$8 sm:$0x7]  ;;  %s364_s3 = scalar_lea.vmem [#allocation4], %s363_s27  ;;  %p649_p5 = scmp.ne.s32.totalorder %s525_s30, %s648_s29 }
  0x4b   :  { %v365_v37 = vld [vmem:[%s364_s3] ss:$8 sm:$0x7]  ;;  %v466_v38 = vrot.slane %v354_v33, %v709_v2  ;;  %v470_v39 = vrot.slane %v354_v33, %v711_v3  ;;  %v474_v40 = vrot.slane %v354_v33, %v713_v5  ;;  %p653_p6 = scmp.lt.s32.totalorder %s525_s30, %s525_s30  ;;  %p654_p7 = scmp.lt.s32.totalorder %s648_s29, %s648_s29 }
  0x4c   :  { %v482_v41 = vrot.slane %v365_v37, %v709_v2  ;;  %v486_v42 = vrot.slane %v365_v37, %v711_v3  ;;  %v490_v43 = vrot.slane %v365_v37, %v713_v5 }
  0x4d   :  { %v509_v44 = vsel %vm264_vm5, %v506_v34, %v466_v38  ;;  %v510_v45 = vsel %vm264_vm5, %v507_v35, %v470_v39  ;;  %v511_v46 = vsel %vm264_vm5, %v508_v36, %v474_v40  ;;  %p655_p8 = por %p654_p7, %p653_p6 }
  0x4e   :  { %v512_v47 = vsel %vm268_vm6, %v509_v44, %v482_v41  ;;  %v513_v48 = vsel %vm268_vm6, %v510_v45, %v486_v42  ;;  %v514_v49 = vsel %vm268_vm6, %v511_v46, %v490_v43 }
  0x4f   :  { %516 = vst [vmem:[#allocation7 + $0x18] sm:$0xff] %v512_v47  ;;  %517 = vst [vmem:[#allocation7 + $0x20] sm:$0xff] %v513_v48  ;;  %p656_p9 = pnand %p655_p8, %p649_p5 }
  0x50   :  { %518 = vst.msk [vmem:[#allocation7 + $0x28] sm:$0xff] %vm274_vm7, %v514_v49 }
  0x51   :  { %659 = shalt.err (!%p656_p9)
}
  0x52   :  { %530 = dma.vmem_to_hbm [thread:$0]  %s525_s30, 768, %s861_s2, [#allocation6], %s676_s15, %s676_s15, %s677_s16  }
  0x53   :  { %672 = dma.done.wait [#allocation6], 768  }
  0x54   :  { %673 = vsyncadd [#allocation6], 4294966528 }
  0x55   :  { %534 = vsyncpa [#allocation5], 1 }
  0x56   :  { %535 = vsyncpa [#allocation6], 1 }

</bundles_post_ra>
